<compile_context>
chip_gen: v7x
topology: tpu7x:2x2x1
jax: 0.10.0
libtpu: 0.0.40
codegen_flags: <defaults>
</compile_context>

<pallas_src>
import functools

import jax
import jax.numpy as jnp
from jax import lax
from jax.experimental import pallas as pl
from jax.experimental.pallas import tpu as pltpu


# ------------------------------ tile sizing ---------------------------------

def _round_up(x, m):
    return ((x + m - 1) // m) * m


def _pick_tile_b(batch, n_classes, itemsize, *, target_bytes=2 << 20, max_rows=1024):
    """Rows per batch tile so one logits block is ~2 MiB in its HBM dtype."""
    rows = max(16, target_bytes // max(n_classes * itemsize, 1))
    rows = min(rows, max_rows, _round_up(batch, 16))
    rows = max(16, (rows // 16) * 16)   # multiple of 16 (bf16 sublane packing; also 8 for f32)
    return int(rows)


# ------------------------------ Pallas kernel --------------------------------

def _label_smoothing_kernel(pred_ref, tgt_ref, loss_ref, *,
                            classes, smoothing, tile_b):
    """One batch tile of LabelSmoothingLoss.forward.

    pred_ref : [tile_b, C]  logits tile, native dtype (rows past B are padding)
    tgt_ref  : [b_pad, 1]   resident int32 targets (whole padded batch)
    loss_ref : [tile_b, 1]  per-row loss for this tile (padding rows masked by
                            Pallas on writeback)
    """
    step = pl.program_id(0)
    logits = pred_ref[...].astype(jnp.float32)                       # [TB, C]
    tb, c = logits.shape

    # Row statistics for a numerically stable log-softmax (max computed once).
    m = jnp.max(logits, axis=-1, keepdims=True)                      # [TB, 1]
    log_z = jnp.log(jnp.sum(jnp.exp(logits - m), axis=-1, keepdims=True))
    sum_z = jnp.sum(logits, axis=-1, keepdims=True) - jnp.float32(c) * m

    # Target logit via lane-iota compare broadcast against the [TB,1] targets.
    start = pl.multiple_of(step * tile_b, tile_b)
    tgt = tgt_ref[pl.ds(start, tile_b), :]                           # [TB, 1] i32
    cls_idx = lax.broadcasted_iota(jnp.int32, (1, c), 1)             # [1, C]
    z_t = jnp.sum(jnp.where(cls_idx == tgt, logits, 0.0),
                  axis=-1, keepdims=True) - m                        # [TB, 1]

    confidence = jnp.float32(1.0 - smoothing)
    fill = jnp.float32(smoothing / (classes - 1))
    # loss_i = sum_c(-true_dist * logp)
    #        = -(confidence - fill)*(z_t - logZ) - fill*(sum_z - C*logZ)
    loss_ref[...] = (-(confidence - fill) * (z_t - log_z)
                     - fill * (sum_z - jnp.float32(c) * log_z))


# --------------------------------- Wrapper ------------------------------------

def label_smoothing_loss(pred, target, classes, smoothing=0.0, *, tile_b=None):
    """Pallas equivalent of LabelSmoothingLoss(classes, smoothing)(pred, target).

    pred: [B, C] logits (any float dtype; streamed in native dtype),
    target: [B] int class ids. Returns scalar f32 loss.
    """
    b, c = pred.shape
    itemsize = jnp.dtype(pred.dtype).itemsize
    if tile_b is None:
        tile_b = _pick_tile_b(b, c, itemsize)
    tile_b = int(tile_b)
    grid_b = pl.cdiv(b, tile_b)
    b_pad = grid_b * tile_b

    # Only the tiny target vector gets padded (logits are never copied/padded).
    tgt2d = target.astype(jnp.int32).reshape(b, 1)
    if b_pad != b:
        tgt2d = jnp.pad(tgt2d, ((0, b_pad - b), (0, 0)))

    kernel = functools.partial(
        _label_smoothing_kernel,
        classes=int(classes), smoothing=float(smoothing), tile_b=tile_b)

    per_row = pl.pallas_call(
        kernel,
        out_shape=jax.ShapeDtypeStruct((b, 1), jnp.float32),
        grid_spec=pltpu.PrefetchScalarGridSpec(
            num_scalar_prefetch=0,
            grid=(grid_b,),
            in_specs=[
                # Logits: one [tile_b, C] block per grid step, native dtype.
                pl.BlockSpec((tile_b, c), lambda i: (i, 0)),
                # Targets: resident full array, fetched once, sliced in-kernel.
                pl.BlockSpec((b_pad, 1), lambda i: (0, 0)),
            ],
            out_specs=pl.BlockSpec((tile_b, 1), lambda i: (i, 0)),
        ),
        compiler_params=pltpu.CompilerParams(
            dimension_semantics=("parallel",),          # megacore-shardable on v7x
            vmem_limit_bytes=48 * 1024 * 1024),
    )(pred, tgt2d)

    # Tiny final reduction (mean over B rows) done in JAX.
    return jnp.mean(per_row)


# ----------------------------- Pure-JAX reference -----------------------------

def _reference_loss(pred, target, classes, smoothing):
    logp = jax.nn.log_softmax(pred.astype(jnp.float32), axis=-1)
    true_dist = jnp.full(pred.shape, smoothing / (classes - 1), jnp.float32)
    true_dist = true_dist.at[jnp.arange(pred.shape[0]), target].set(1.0 - smoothing)
    return jnp.mean(jnp.sum(-true_dist * logp, axis=-1))


# ----------------------------------- Main --------------------------------------

if __name__ == "__main__":
    key = jax.random.PRNGKey(0)
    k1, k2, k3, k4, k5, k6 = jax.random.split(key, 6)
    SMOOTHING = 0.1

    # Case 1: shapes implied by the module (small batch, 10 classes), f32.
    B1, C1 = 2, 10
    pred1 = jax.random.normal(k1, (B1, C1), jnp.float32)
    tgt1 = jax.random.randint(k2, (B1,), 0, C1, jnp.int32)
    loss1 = label_smoothing_loss(pred1, tgt1, C1, SMOOTHING)

    # Case 2: lane-dense class dim, f32, single auto-sized tile.
    B2, C2 = 16, 128
    pred2 = jax.random.normal(k3, (B2, C2), jnp.float32)
    tgt2 = jax.random.randint(k4, (B2,), 0, C2, jnp.int32)
    loss2 = label_smoothing_loss(pred2, tgt2, C2, SMOOTHING)

    # Case 3: bf16 logits streamed natively, non-divisible batch -> multi-step
    # grid with a partial last block and in-kernel resident-target slicing.
    B3, C3 = 37, 100
    pred3 = jax.random.normal(k5, (B3, C3), jnp.float32).astype(jnp.bfloat16)
    tgt3 = jax.random.randint(k6, (B3,), 0, C3, jnp.int32)
    loss3 = label_smoothing_loss(pred3, tgt3, C3, SMOOTHING, tile_b=16)

    jax.block_until_ready((loss1, loss2, loss3))

    ref1 = _reference_loss(pred1, tgt1, C1, SMOOTHING)
    ref2 = _reference_loss(pred2, tgt2, C2, SMOOTHING)
    ref3 = _reference_loss(pred3, tgt3, C3, SMOOTHING)

    assert loss1.shape == () and loss2.shape == () and loss3.shape == ()
    assert bool(jnp.allclose(loss1, ref1, rtol=1e-5, atol=1e-5))
    assert bool(jnp.allclose(loss2, ref2, rtol=1e-5, atol=1e-5))
    assert bool(jnp.allclose(loss3, ref3, rtol=1e-4, atol=1e-4))
    print("KERNEL_OK")
</pallas_src>

<mosaic_0001>
module attributes {stable_mosaic.version = 11 : i64} {
  func.func @_label_smoothing_kernel(%arg0: i32, %arg1: memref<16x10xf32, #tpu.memory_space<vmem>>, %arg2: memref<16x1xi32, #tpu.memory_space<vmem>>, %arg3: memref<16x1xf32, #tpu.memory_space<vmem>>) attributes {dimension_semantics = [#tpu.dimension_semantics<parallel>], iteration_bounds = array<i64: 1>, scalar_prefetch = 0 : i64, scratch_operands = 0 : i64, tpu.core_type = #tpu.core_type<tc>, window_params = [{transform_indices = @transform_0, window_bounds = array<i64: 16, 10>}, {pipeline_mode = #tpu.pipeline_mode<synchronous>, transform_indices = @transform_1, window_bounds = array<i64: 16, 1>}, {transform_indices = @transform_2, window_bounds = array<i64: 16, 1>}]} {
    %c0 = arith.constant 0 : index
    %c0_0 = arith.constant 0 : index
    %0 = vector.load %arg1[%c0, %c0_0] : memref<16x10xf32, #tpu.memory_space<vmem>>, vector<16x10xf32>
    %cst = arith.constant dense<0xFF800000> : vector<16xf32>
    %1 = vector.multi_reduction <maximumf>, %0, %cst [1] : vector<16x10xf32> to vector<16xf32>
    %2 = vector.shape_cast %1 : vector<16xf32> to vector<16x1xf32>
    %3 = vector.broadcast %2 : vector<16x1xf32> to vector<16x10xf32>
    %4 = arith.subf %0, %3 : vector<16x10xf32>
    %5 = math.exp %4 : vector<16x10xf32>
    %cst_1 = arith.constant dense<0.000000e+00> : vector<16xf32>
    %6 = vector.multi_reduction <add>, %5, %cst_1 [1] : vector<16x10xf32> to vector<16xf32>
    %7 = vector.shape_cast %6 : vector<16xf32> to vector<16x1xf32>
    %8 = math.log %7 : vector<16x1xf32>
    %cst_2 = arith.constant dense<0.000000e+00> : vector<16xf32>
    %9 = vector.multi_reduction <add>, %0, %cst_2 [1] : vector<16x10xf32> to vector<16xf32>
    %10 = vector.shape_cast %9 : vector<16xf32> to vector<16x1xf32>
    %cst_3 = arith.constant 1.000000e+01 : f32
    %11 = vector.broadcast %cst_3 : f32 to vector<16x1xf32>
    %12 = arith.mulf %11, %2 : vector<16x1xf32>
    %13 = arith.subf %10, %12 : vector<16x1xf32>
    %c16_i32 = arith.constant 16 : i32
    %14 = arith.muli %arg0, %c16_i32 : i32
    %15 = tpu.assume_multiple %14, 16 : i32
    %16 = arith.index_cast %15 : i32 to index
    %c0_4 = arith.constant 0 : index
    %17 = vector.load %arg2[%16, %c0_4] : memref<16x1xi32, #tpu.memory_space<vmem>>, vector<16x1xi32>
    %18 = tpu.iota {dimensions = array<i32: 1>} : vector<1x10xi32>
    %19 = vector.broadcast %18 : vector<1x10xi32> to vector<16x10xi32>
    %20 = vector.broadcast %17 : vector<16x1xi32> to vector<16x10xi32>
    %21 = arith.cmpi eq, %19, %20 : vector<16x10xi32>
    %cst_5 = arith.constant 0.000000e+00 : f32
    %22 = vector.broadcast %cst_5 : f32 to vector<16x10xf32>
    %23 = arith.select %21, %0, %22 : vector<16x10xi1>, vector<16x10xf32>
    %cst_6 = arith.constant dense<0.000000e+00> : vector<16xf32>
    %24 = vector.multi_reduction <add>, %23, %cst_6 [1] : vector<16x10xf32> to vector<16xf32>
    %25 = vector.shape_cast %24 : vector<16xf32> to vector<16x1xf32>
    %26 = arith.subf %25, %2 : vector<16x1xf32>
    %cst_7 = arith.constant 0.899999976 : f32
    %cst_8 = arith.constant 0.0111111114 : f32
    %27 = arith.subf %cst_7, %cst_8 : f32
    %cst_9 = arith.constant 0.000000e+00 : f32
    %28 = arith.subf %cst_9, %27 : f32
    %29 = arith.subf %26, %8 : vector<16x1xf32>
    %30 = vector.broadcast %28 : f32 to vector<16x1xf32>
    %31 = arith.mulf %30, %29 : vector<16x1xf32>
    %cst_10 = arith.constant 1.000000e+01 : f32
    %32 = vector.broadcast %cst_10 : f32 to vector<16x1xf32>
    %33 = arith.mulf %32, %8 : vector<16x1xf32>
    %34 = arith.subf %13, %33 : vector<16x1xf32>
    %cst_11 = arith.constant 0.0111111114 : f32
    %35 = vector.broadcast %cst_11 : f32 to vector<16x1xf32>
    %36 = arith.mulf %35, %34 : vector<16x1xf32>
    %37 = arith.subf %31, %36 : vector<16x1xf32>
    %c0_12 = arith.constant 0 : index
    %c0_13 = arith.constant 0 : index
    %38 = vector.load %arg3[%c0_12, %c0_13] : memref<16x1xf32, #tpu.memory_space<vmem>>, vector<16x1xf32>
    tpu.vector_store %arg3[%c0_12, %c0_13], %37 {strides = array<i32>} : memref<16x1xf32, #tpu.memory_space<vmem>>, vector<16x1xf32>,
    return
  }
  func.func @transform_0(%arg0: i32) -> (i32, i32) {
    %c0_i32 = arith.constant 0 : i32
    %c0_i32_0 = arith.constant 0 : i32
    return %arg0, %c0_i32 : i32, i32
  }
  func.func @transform_1(%arg0: i32) -> (i32, i32) {
    %c0_i32 = arith.constant 0 : i32
    %c0_i32_0 = arith.constant 0 : i32
    %c0_i32_1 = arith.constant 0 : i32
    return %c0_i32, %c0_i32_0 : i32, i32
  }
  func.func @transform_2(%arg0: i32) -> (i32, i32) {
    %c0_i32 = arith.constant 0 : i32
    %c0_i32_0 = arith.constant 0 : i32
    return %arg0, %c0_i32 : i32, i32
  }
}

</mosaic_0001>

<bundles_post_ra>
// kernel: tpu_custom_call.1
= control target key start
LH: loop header
LB: loop body
LE: loop exit
PB: predicated region body
PF: predicated region fallthrough
CT: control target
= control target key end

     0   :  { %vm13_vm0 = vcmask 80896   ;;  %v135_v4 = vmov 0   ;;  %v50_v13 = vlaneseq  ;;  %vm82_vm3 = vcmask 7168   ;;  %s174_s0 = inlined_call_operand.vmem [shape: f32[2,10], index: 0, kind: input, shape index: {}]   ;;  %s175_s1 = inlined_call_operand.vmem [shape: s32[16,1], index: 1, kind: input, shape index: {}]   ;;  %s176_s2 = inlined_call_operand.vmem [shape: f32[2,1], index: 2, kind: output, shape index: {}]  }
   0x1   :  { %v11_v0 = vld [vmem:[%s174_s0] sm:$0xff]  ;;  %v12_v1 = vld [vmem:[%s174_s0 + $0x8] sm:$0xff]  ;;  %125 = vset.pattern.permute.xlu1 %v135_v4  ;;  %126 = vset.pattern.permute.xlu0 %v135_v4 }
   0x2   :  { %v48_v2 = vld [vmem:[%s175_s1] sm:$0xff]  ;;  %v14_v3 = vsel %vm13_vm0, %v11_v0, -inf  ;;  %v17_v5 = vsel %vm13_vm0, %v12_v1, -inf  ;;  %v49_v6 = vld [vmem:[%s175_s1 + $0x8] sm:$0xff]  ;;  %v51_v14 = vand.u32 127, %v50_v13  ;;  %v36_v18 = vsel %vm13_vm0, %v11_v0, 0.0 }
   0x3   :  { %15 = vmax.xlane.f32.xlu0 %v14_v3  ;;  %53 = vperm.xlu1 %125, %v48_v2   ;;  %v39_v24 = vsel %vm13_vm0, %v12_v1, 0.0 }
   0x7   :  { %18 = vmax.xlane.f32.xlu0 %v17_v5  ;;  %56 = vperm.xlu1 %125, %v49_v6  }
  0x82   :  { %v54_v15 = vpop.permute.xlu1 %53 }
  0x83   :  { %vm58_vm1 = vcmp.eq.s32.totalorder %v51_v14, %v54_v15 }
  0x84   :  { %v60_v20 = vsel %vm58_vm1, %v11_v0, 0.0 }
  0x85   :  { %v62_v22 = vsel %vm13_vm0, %v60_v20, 0.0 }
  0x86   :  { %v57_v23 = vpop.permute.xlu1 %56 }
  0x87   :  { %vm59_vm2 = vcmp.eq.s32.totalorder %v51_v14, %v57_v23 }
  0x88   :  { %v61_v25 = vsel %vm59_vm2, %v12_v1, 0.0 }
  0x89   :  { %v65_v26 = vsel %vm13_vm0, %v61_v25, 0.0 }
  0x90   :  { %v16_v7 = vpop.xlane.xlu0 %15 }
  0x91   :  { %v20_v8 = vsub.f32 %v11_v0, %v16_v7  ;;  %v42_v33 = vmul.f32 10.0, %v16_v7 }
  0x93   :  { %v22_v9 = vmul.f32 1.442695, %v20_v8 }
  0x94   :  { %v19_v10 = vpop.xlane.xlu0 %18 }
  0x95   :  { %127 = vpow2.f32 %v22_v9  ;;  %v21_v11 = vsub.f32 %v12_v1, %v19_v10 }
  0x97   :  { %v24_v12 = vmul.f32 1.442695, %v21_v11 }
  0x99   :  { %129 = vpow2.f32 %v24_v12 }
  0x9f   :  { %v128_v16 = vpop.eup %127 }
  0xa0   :  { %v26_v17 = vsel %vm13_vm0, %v128_v16, 0.0 }
  0xa1   :  { %27 = vadd.xlane.f32.xlu0 %v26_v17 }
  0xa3   :  { %v130_v19 = vpop.eup %129 }
  0xa4   :  { %v29_v21 = vsel %vm13_vm0, %v130_v19, 0.0 }
  0xa5   :  { %37 = vadd.xlane.f32.xlu0 %v36_v18  ;;  %30 = vadd.xlane.f32.xlu1 %v29_v21 }
  0xa9   :  { %63 = vadd.xlane.f32.xlu0 %v62_v22 }
  0xad   :  { %40 = vadd.xlane.f32.xlu0 %v39_v24 }
  0xb1   :  { %66 = vadd.xlane.f32.xlu0 %v65_v26 }
 0x12e   :  { %v28_v27 = vpop.xlane.xlu0 %27 }
 0x12f   :  { %131 = vlog2.f32 %v28_v27 }
 0x132   :  { %v31_v28 = vpop.xlane.xlu1 %30  ;;  %v38_v29 = vpop.xlane.xlu0 %37 }
 0x133   :  { %133 = vlog2.f32 %v31_v28  ;;  %v44_v37 = vsub.f32 %v38_v29, %v42_v33 }
 0x136   :  { %v64_v30 = vpop.xlane.xlu0 %63 }
 0x137   :  { %v68_v34 = vsub.f32 %v64_v30, %v16_v7 }
 0x139   :  { %v132_v31 = vpop.eup %131 }
 0x13a   :  { %v33_v32 = vmul.f32 0.6931472, %v132_v31  ;;  %v41_v35 = vpop.xlane.xlu0 %40 }
 0x13c   :  { %v74_v36 = vmul.f32 10.0, %v33_v32  ;;  %v70_v38 = vsub.f32 %v68_v34, %v33_v32 }
 0x13d   :  { %v134_v39 = vpop.eup %133 }
 0x13e   :  { %v76_v40 = vsub.f32 %v44_v37, %v74_v36  ;;  %v67_v41 = vpop.xlane.xlu0 %66  ;;  %v72_v43 = vmul.f32 -0.88888884, %v70_v38 }
 0x140   :  { %v78_v42 = vmul.f32 0.011111111, %v76_v40 }
 0x142   :  { %v80_v44 = vsub.f32 %v72_v43, %v78_v42 }
 0x144   :  { %83 = vst.msk [vmem:[#allocation2] sm:$0xff] %vm82_vm3, %v80_v44 }
 0x14b   :  { %v102_v45 = vld [vmem:[#allocation2] sm:$0x3] }
 0x14c   :  { %103 = vst [vmem:[%s176_s2] sm:$0x3] %v102_v45 }

</bundles_post_ra>
